<compile_context>
chip_gen: v7x
topology: tpu7x:2x2x1
jax: 0.10.0
libtpu: 0.0.40
codegen_flags: <defaults>
</compile_context>

<pallas_src>
import functools

import jax
import jax.numpy as jnp
from jax import lax
from jax.experimental import pallas as pl
from jax.experimental.pallas import tpu as pltpu


def _round_up(v, m):
    return (v + m - 1) // m * m


# ---------------------------------------------------------------------------
# Pre-pass: per-output-column renorm scale of W^T (torch.renorm over dim=0).
# scale[n] = max_norm / (||W[n]|| + 1e-7) if ||W[n]|| > max_norm else 1
# ---------------------------------------------------------------------------
def _renorm_scale_kernel(w_ref, s_ref, acc_ref, *, max_norm):
    k = pl.program_id(1)

    @pl.when(k == 0)
    def _():
        acc_ref[...] = jnp.zeros_like(acc_ref)

    w = w_ref[...].astype(jnp.float32)          # f32 elementwise (v5e-safe)
    # W^T tile is (tk, tn): the per-output-column sum of squares is a sublane
    # reduction (no cross-lane XLU reduce needed).
    acc_ref[...] += jnp.sum(w * w, axis=0, keepdims=True)

    @pl.when(k == pl.num_programs(1) - 1)
    def _():
        sumsq = acc_ref[...]
        # Condition on the squared norm; keep ATen's exact max_norm/(norm+1e-7)
        # form (tiny (1, tn) divide, negligible).
        norm = jnp.sqrt(sumsq)
        s_ref[...] = jnp.where(sumsq > max_norm * max_norm,
                               max_norm / (norm + 1e-7),
                               jnp.float32(1.0))


def _renorm_scale(wt_p, max_norm, tn, tk):
    Kp, Np = wt_p.shape
    return pl.pallas_call(
        functools.partial(_renorm_scale_kernel, max_norm=float(max_norm)),
        out_shape=jax.ShapeDtypeStruct((1, Np), jnp.float32),
        grid=(Np // tn, Kp // tk),                       # reduction axis last
        in_specs=[pl.BlockSpec((tk, tn), lambda j, k: (k, j))],
        out_specs=pl.BlockSpec((1, tn), lambda j, k: (0, j)),
        scratch_shapes=[pltpu.VMEM((1, tn), jnp.float32)],
        compiler_params=pltpu.CompilerParams(
            dimension_semantics=("parallel", "arbitrary")),
        cost_estimate=pl.CostEstimate(
            flops=2 * Kp * Np, transcendentals=Np,
            bytes_accessed=wt_p.size * wt_p.dtype.itemsize + Np * 4),
    )(wt_p)


# ---------------------------------------------------------------------------
# Main tiled matmul kernel: o = (x @ W^T) * scale + bias
# ---------------------------------------------------------------------------
def _matmul_kernel(*refs, has_scale, has_bias):
    it = iter(refs)
    x_ref = next(it)
    w_ref = next(it)
    s_ref = next(it) if has_scale else None
    b_ref = next(it) if has_bias else None
    o_ref = next(it)
    acc_ref = next(it)

    k = pl.program_id(2)

    @pl.when(k == 0)
    def _():
        acc_ref[...] = jnp.zeros_like(acc_ref)

    # Single-pass MXU matmul (default precision), f32 accumulation in scratch.
    acc_ref[...] += jnp.dot(x_ref[...], w_ref[...],
                            preferred_element_type=jnp.float32)

    @pl.when(k == pl.num_programs(2) - 1)
    def _():
        y = acc_ref[...]
        if has_scale:
            y = y * s_ref[...]                    # renorm folded into epilogue
        if has_bias:
            y = y + b_ref[...].astype(jnp.float32)
        o_ref[...] = y.astype(o_ref.dtype)


def linear_modified_forward(xb, weight, bias=None, max_norm=None,
                            tm=256, tn=256, tk=512):
    """Pallas forward of LinearModified: xb @ renorm(W).T (+ bias)."""
    assert xb.ndim == 2, "xb should have 2 dimensions"
    M, K = xb.shape
    N, Kw = weight.shape
    assert Kw == K, "weight shape mismatch with lazily inferred in_features"

    # MXU-native (K, N) weight layout: transpose once on the XLA side so the
    # kernel contraction is (M,K) x (K,N) with no in-kernel transpose.
    wt = weight.T

    # Lane-dense, hardware-aligned tiles clamped to the (padded) problem size:
    # tm multiple of 8 (sublanes), tn/tk multiples of 128 (lanes).
    tm = min(_round_up(M, 8), tm)
    tn = min(_round_up(N, 128), tn)
    tk = min(_round_up(K, 128), tk)
    Mp, Kp, Np = _round_up(M, tm), _round_up(K, tk), _round_up(N, tn)

    x_p = xb if (Mp, Kp) == (M, K) else jnp.pad(xb, ((0, Mp - M), (0, Kp - K)))
    wt_p = wt if (Kp, Np) == (K, N) else jnp.pad(wt, ((0, Kp - K), (0, Np - N)))

    n_k = Kp // tk
    has_scale = max_norm is not None
    has_bias = bias is not None

    args = [x_p, wt_p]
    if n_k >= 3:
        # Small-batch Linear is weight-bandwidth bound: deepen the weight
        # pipeline to hide DMA latency.
        w_spec = pl.BlockSpec((tk, tn), lambda i, j, k: (k, j),
                              pipeline_mode=pl.Buffered(3))
    else:
        w_spec = pl.BlockSpec((tk, tn), lambda i, j, k: (k, j))
    in_specs = [pl.BlockSpec((tm, tk), lambda i, j, k: (i, k)), w_spec]

    if has_scale:
        scale = _renorm_scale(wt_p, max_norm, tn, tk)
        args.append(scale)
        in_specs.append(pl.BlockSpec((1, tn), lambda i, j, k: (0, j)))
    if has_bias:
        b_p = bias.reshape(1, N)
        if Np != N:
            b_p = jnp.pad(b_p, ((0, 0), (0, Np - N)))
        args.append(b_p)
        in_specs.append(pl.BlockSpec((1, tn), lambda i, j, k: (0, j)))

    bytes_accessed = (x_p.size * x_p.dtype.itemsize
                      + wt_p.size * wt_p.dtype.itemsize * (Mp // tm)
                      + Mp * Np * xb.dtype.itemsize)

    out_p = pl.pallas_call(
        functools.partial(_matmul_kernel, has_scale=has_scale, has_bias=has_bias),
        out_shape=jax.ShapeDtypeStruct((Mp, Np), xb.dtype),
        grid=(Mp // tm, Np // tn, n_k),
        in_specs=in_specs,
        out_specs=pl.BlockSpec((tm, tn), lambda i, j, k: (i, j)),
        scratch_shapes=[pltpu.VMEM((tm, tn), jnp.float32)],
        compiler_params=pltpu.CompilerParams(
            dimension_semantics=("parallel", "parallel", "arbitrary")),
        cost_estimate=pl.CostEstimate(
            flops=2 * Mp * Kp * Np, transcendentals=0,
            bytes_accessed=bytes_accessed),
    )(*args)

    return out_p[:M, :N]


# ---------------------------------------------------------------------------
# Pure-JAX reference (PyTorch semantics: renorm W, then x @ W.T + b)
# ---------------------------------------------------------------------------
def reference_forward(xb, weight, bias=None, max_norm=None):
    w = weight
    if max_norm is not None:
        norm = jnp.sqrt(jnp.sum(w * w, axis=1, keepdims=True))
        w = w * jnp.where(norm > max_norm, max_norm / (norm + 1e-7), 1.0)
    y = jnp.dot(xb, w.T, precision=lax.Precision.HIGHEST)
    if bias is not None:
        y = y + bias[None, :]
    return y


if __name__ == "__main__":
    def check(xb, weight, bias, max_norm):
        out = jax.block_until_ready(
            linear_modified_forward(xb, weight, bias=bias, max_norm=max_norm))
        ref = jax.block_until_ready(
            reference_forward(xb, weight, bias=bias, max_norm=max_norm))
        assert out.shape == ref.shape
        # Kernel uses single-pass (default-precision) MXU matmul; compare with
        # a combined abs/rel tolerance against the HIGHEST-precision reference.
        err = float(jnp.max(jnp.abs(out - ref) / (jnp.abs(ref) + 1.0)))
        if not err < 2e-2:
            raise AssertionError(
                f"Pallas LinearModified mismatch vs JAX reference: {err}")

    # --- Small shapes matching the lazy module's 2-D forward ----------------
    B, IN_F, OUT_F = 2, 32, 8
    MAX_NORM = 0.25
    kx, kw1, kw2, kb = jax.random.split(jax.random.PRNGKey(0), 4)
    xb = jax.random.normal(kx, (B, IN_F), jnp.float32)

    # Constrained-layer weight: most rows exceed max_norm (renorm active);
    # row 0 is shrunk well below it so the "unchanged" branch is exercised too.
    w_con = 0.3 * jax.random.normal(kw1, (OUT_F, IN_F), jnp.float32)
    w_con = w_con.at[0].multiply(0.01)
    w_lin = 0.1 * jax.random.normal(kw2, (OUT_F, IN_F), jnp.float32)
    b_lin = 0.1 * jax.random.normal(kb, (OUT_F,), jnp.float32)

    # LinearModified(OUT_F, bias=False, max_norm=0.25) -> LinearConstrained
    check(xb, w_con, None, MAX_NORM)
    # LinearModified(OUT_F)                            -> plain Linear, no bias
    check(xb, w_lin, None, None)
    # LinearModified(OUT_F, bias=True)                 -> plain Linear + bias
    check(xb, w_lin, b_lin, None)

    # --- Moderate shape exercising the full (M, N, K) grid + K accumulation -
    B2, IN2, OUT2 = 20, 700, 300
    kx2, kw3, kb2 = jax.random.split(jax.random.PRNGKey(1), 3)
    xb2 = jax.random.normal(kx2, (B2, IN2), jnp.float32)
    w2 = 0.1 * jax.random.normal(kw3, (OUT2, IN2), jnp.float32)
    b2 = 0.1 * jax.random.normal(kb2, (OUT2,), jnp.float32)
    check(xb2, w2, b2, MAX_NORM)

    print("KERNEL_OK")
</pallas_src>

<mosaic_0001>
module attributes {stable_mosaic.version = 11 : i64} {
  func.func @_renorm_scale_kernel(%arg0: i32, %arg1: i32, %arg2: memref<128x128xf32, #tpu.memory_space<vmem>>, %arg3: memref<1x128xf32, #tpu.memory_space<vmem>>, %arg4: memref<1x128xf32, #tpu.memory_space<vmem>>) attributes {dimension_semantics = [#tpu.dimension_semantics<parallel>, #tpu.dimension_semantics<arbitrary>], iteration_bounds = array<i64: 1, 1>, scalar_prefetch = 0 : i64, scratch_operands = 1 : i64, tpu.core_type = #tpu.core_type<tc>, window_params = [{transform_indices = @transform_0, window_bounds = array<i64: 128, 128>}, {transform_indices = @transform_1, window_bounds = array<i64: 1, 128>}]} {
    %c0_i32 = arith.constant 0 : i32
    %0 = arith.cmpi eq, %arg1, %c0_i32 : i32
    %1 = arith.extui %0 : i1 to i32
    %c0_i32_0 = arith.constant 0 : i32
    %2 = arith.cmpi ne, %1, %c0_i32_0 : i32
    scf.if %2 {
      %cst_8 = arith.constant 0.000000e+00 : f32
      %13 = vector.broadcast %cst_8 : f32 to vector<1x128xf32>
      %c0_9 = arith.constant 0 : index
      %c0_10 = arith.constant 0 : index
      %14 = vector.load %arg4[%c0_9, %c0_10] : memref<1x128xf32, #tpu.memory_space<vmem>>, vector<1x128xf32>
      tpu.vector_store %arg4[%c0_9, %c0_10], %13 {strides = array<i32>} : memref<1x128xf32, #tpu.memory_space<vmem>>, vector<1x128xf32>,
    } else {
    }
    %c0 = arith.constant 0 : index
    %c0_1 = arith.constant 0 : index
    %3 = vector.load %arg2[%c0, %c0_1] : memref<128x128xf32, #tpu.memory_space<vmem>>, vector<128x128xf32>
    %c0_2 = arith.constant 0 : index
    %c0_3 = arith.constant 0 : index
    %4 = vector.load %arg4[%c0_2, %c0_3] : memref<1x128xf32, #tpu.memory_space<vmem>>, vector<1x128xf32>
    %5 = arith.mulf %3, %3 : vector<128x128xf32>
    %cst = arith.constant dense<0.000000e+00> : vector<128xf32>
    %6 = vector.multi_reduction <add>, %5, %cst [0] : vector<128x128xf32> to vector<128xf32>
    %7 = vector.shape_cast %6 : vector<128xf32> to vector<1x128xf32>
    %8 = arith.addf %4, %7 : vector<1x128xf32>
    %c0_4 = arith.constant 0 : index
    %c0_5 = arith.constant 0 : index
    %9 = vector.load %arg4[%c0_4, %c0_5] : memref<1x128xf32, #tpu.memory_space<vmem>>, vector<1x128xf32>
    tpu.vector_store %arg4[%c0_4, %c0_5], %8 {strides = array<i32>} : memref<1x128xf32, #tpu.memory_space<vmem>>, vector<1x128xf32>,
    %c0_i32_6 = arith.constant 0 : i32
    %10 = arith.cmpi eq, %arg1, %c0_i32_6 : i32
    %11 = arith.extui %10 : i1 to i32
    %c0_i32_7 = arith.constant 0 : i32
    %12 = arith.cmpi ne, %11, %c0_i32_7 : i32
    scf.if %12 {
      %c0_8 = arith.constant 0 : index
      %c0_9 = arith.constant 0 : index
      %13 = vector.load %arg4[%c0_8, %c0_9] : memref<1x128xf32, #tpu.memory_space<vmem>>, vector<1x128xf32>
      %14 = math.sqrt %13 : vector<1x128xf32>
      %cst_10 = arith.constant 6.250000e-02 : f32
      %15 = vector.broadcast %cst_10 : f32 to vector<1x128xf32>
      %16 = arith.cmpf ogt, %13, %15 : vector<1x128xf32>
      %cst_11 = arith.constant 1.000000e-07 : f32
      %17 = vector.broadcast %cst_11 : f32 to vector<1x128xf32>
      %18 = arith.addf %14, %17 : vector<1x128xf32>
      %cst_12 = arith.constant 2.500000e-01 : f32
      %19 = vector.broadcast %cst_12 : f32 to vector<1x128xf32>
      %20 = arith.divf %19, %18 : vector<1x128xf32>
      %cst_13 = arith.constant 1.000000e+00 : f32
      %21 = vector.broadcast %cst_13 : f32 to vector<1x128xf32>
      %22 = arith.select %16, %20, %21 : vector<1x128xi1>, vector<1x128xf32>
      %c0_14 = arith.constant 0 : index
      %c0_15 = arith.constant 0 : index
      %23 = vector.load %arg3[%c0_14, %c0_15] : memref<1x128xf32, #tpu.memory_space<vmem>>, vector<1x128xf32>
      tpu.vector_store %arg3[%c0_14, %c0_15], %22 {strides = array<i32>} : memref<1x128xf32, #tpu.memory_space<vmem>>, vector<1x128xf32>,
    } else {
    }
    return
  }
  func.func @transform_0(%arg0: i32, %arg1: i32) -> (i32, i32) {
    %c0_i32 = arith.constant 0 : i32
    return %arg1, %arg0 : i32, i32
  }
  func.func @transform_1(%arg0: i32, %arg1: i32) -> (i32, i32) {
    %c0_i32 = arith.constant 0 : i32
    %c0_i32_0 = arith.constant 0 : i32
    return %c0_i32, %arg0 : i32, i32
  }
}

</mosaic_0001>

<bundles_post_ra>
// kernel: tpu_custom_call.1
= control target key start
LH: loop header
LB: loop body
LE: loop exit
PB: predicated region body
PF: predicated region fallthrough
CT: control target
= control target key end

     0   :  { %6 = vsyncpa [#allocation4], 0  ;;  %s212_s0 = inlined_call_operand.hbm [shape: f32[128,128], index: 0, kind: input, shape index: {}]   ;;  %s213_s1 = inlined_call_operand.hbm [shape: f32[1,128], index: 1, kind: output, shape index: {}]  }
   0x1   :  { %7 = vsyncpa [#allocation5], 0  ;;  %s173_s6 = smov [#allocation3]   ;;  %s125_s10 = scalar_lea.hbm %s212_s0, 2048 }
   0x2   :  { %s13_s7 = sshll.u32 %s173_s6, 4  ;;  %p126_p0 = scmp.ne.s32.totalorder %s212_s0, %s125_s10  ;;  %s14_s7 = int_to_ptr.vmem [resolvable:$true] %s13_s7 }
   0x3   :  { %p129_p1 = scmp.lt.u32.totalorder %s125_s10, %s212_s0 }
   0x5   :  { %p131_p2 = pnand %p129_p1, %p126_p0 }
   0x7   :  { %134 = shalt.err (!%p131_p2)
}
   0x8   :  { %s135_s15 = scalar_lea.vmem %s14_s7, 2048  ;;  %p140_p4 = scmp.lt.s32.totalorder %s14_s7, %s14_s7 }
   0x9   :  { %p136_p3 = scmp.ne.s32.totalorder %s14_s7, %s135_s15  ;;  %p141_p5 = scmp.lt.s32.totalorder %s135_s15, %s135_s15 }
   0xb   :  { %p142_p6 = por %p141_p5, %p140_p4 }
   0xd   :  { %p143_p7 = pnand %p142_p6, %p136_p3 }
   0xf   :  { %146 = shalt.err (!%p143_p7)
}
  0x10   :  { %s174_s16 = smov 128   ;;  %s175_s17 = smov 8  }
  0x11   :  { %19 = dma.hbm_to_vmem [thread:$0]  %s212_s0, 2048, %s14_s7, [#allocation4], %s174_s16, %s174_s16, %s175_s17  }
  0x12   :  { %169 = dma.done.wait [#allocation4], 2048  }
  0x13   :  { %170 = vsyncadd [#allocation4], 4294965248  ;;  %v176_v0 = vmov 0.0   ;;  %v28_v1 = vld [vmem:[#allocation3] sm:$0xff]  ;;  %v29_v2 = vld [vmem:[#allocation3 + $0x8] sm:$0xff]  ;;  %s177_s0 = smov [#allocation6]  }
  0x14   :  { %27 = vst [vmem:[#allocation2] sm:$0x1] %v176_v0  ;;  %v30_v3 = vld [vmem:[#allocation3 + $0x10] sm:$0xff]  ;;  %v31_v4 = vld [vmem:[#allocation3 + $0x18] sm:$0xff]  ;;  %v45_v5 = vmul.f32 %v28_v1, %v28_v1  ;;  %v46_v6 = vmul.f32 %v29_v2, %v29_v2  ;;  %v32_v8 = vld [vmem:[#allocation3 + $0x20] sm:$0xff]  ;;  %s107_s20 = sshll.u32 %s177_s0, 4  ;;  %s108_s20 = int_to_ptr.vmem [resolvable:$true] %s107_s20 }
  0x15   :  { %v47_v7 = vmul.f32 %v30_v3, %v30_v3  ;;  %v48_v9 = vmul.f32 %v31_v4, %v31_v4  ;;  %v33_v11 = vld [vmem:[#allocation3 + $0x28] sm:$0xff]  ;;  %v49_v12 = vmul.f32 %v32_v8, %v32_v8  ;;  %v34_v14 = vld [vmem:[#allocation3 + $0x30] sm:$0xff]  ;;  %v35_v17 = vld [vmem:[#allocation3 + $0x38] sm:$0xff]  ;;  %s147_s21 = scalar_lea.vmem %s108_s20, 16  ;;  %s151_s22 = scalar_lea.vmem %s108_s20, 32 }
  0x16   :  { %v61_v10 = vadd.f32 %v46_v6, %v45_v5  ;;  %v50_v15 = vmul.f32 %v33_v11, %v33_v11  ;;  %v51_v18 = vmul.f32 %v34_v14, %v34_v14  ;;  %v36_v20 = vld [vmem:[#allocation3 + $0x40] sm:$0xff]  ;;  %v52_v21 = vmul.f32 %v35_v17, %v35_v17  ;;  %v37_v23 = vld [vmem:[#allocation3 + $0x48] sm:$0xff]  ;;  %v38_v26 = vld [vmem:[#allocation3 + $0x50] sm:$0xff]  ;;  %p148_p8 = scmp.ne.s32.totalorder %s108_s20, %s147_s21  ;;  %p152_p9 = scmp.lt.s32.totalorder %s108_s20, %s108_s20 }
  0x17   :  { %v53_v24 = vmul.f32 %v36_v20, %v36_v20  ;;  %v54_v27 = vmul.f32 %v37_v23, %v37_v23  ;;  %v39_v29 = vld [vmem:[#allocation3 + $0x58] sm:$0xff]  ;;  %v55_v30 = vmul.f32 %v38_v26, %v38_v26  ;;  %v40_v32 = vld [vmem:[#allocation3 + $0x60] sm:$0xff]  ;;  %v41_v35 = vld [vmem:[#allocation3 + $0x68] sm:$0xff]  ;;  %p153_p10 = scmp.lt.s32.totalorder %s151_s22, %s147_s21 }
  0x18   :  { %v62_v13 = vadd.f32 %v61_v10, %v47_v7  ;;  %v56_v33 = vmul.f32 %v39_v29, %v39_v29  ;;  %v57_v36 = vmul.f32 %v40_v32, %v40_v32  ;;  %v42_v38 = vld [vmem:[#allocation3 + $0x70] sm:$0xff]  ;;  %v58_v39 = vmul.f32 %v41_v35, %v41_v35  ;;  %v43_v41 = vld [vmem:[#allocation3 + $0x78] sm:$0xff] }
  0x19   :  { %v59_v42 = vmul.f32 %v42_v38, %v42_v38  ;;  %v60_v44 = vmul.f32 %v43_v41, %v43_v41  ;;  %p154_p11 = por %p153_p10, %p152_p9 }
  0x1a   :  { %v63_v16 = vadd.f32 %v62_v13, %v48_v9 }
  0x1b   :  { %v44_v53 = vld [vmem:[#allocation2] sm:$0x1]  ;;  %p155_p12 = pnand %p154_p11, %p148_p8 }
  0x1c   :  { %v64_v19 = vadd.f32 %v63_v16, %v49_v12 }
  0x1e   :  { %v65_v22 = vadd.f32 %v64_v19, %v50_v15 }
  0x20   :  { %v66_v25 = vadd.f32 %v65_v22, %v51_v18 }
  0x22   :  { %v67_v28 = vadd.f32 %v66_v25, %v52_v21 }
  0x24   :  { %v68_v31 = vadd.f32 %v67_v28, %v53_v24 }
  0x26   :  { %v69_v34 = vadd.f32 %v68_v31, %v54_v27 }
  0x28   :  { %v70_v37 = vadd.f32 %v69_v34, %v55_v30 }
  0x2a   :  { %v71_v40 = vadd.f32 %v70_v37, %v56_v33 }
  0x2c   :  { %v72_v43 = vadd.f32 %v71_v40, %v57_v36 }
  0x2e   :  { %v73_v45 = vadd.f32 %v72_v43, %v58_v39 }
  0x30   :  { %v74_v46 = vadd.f32 %v73_v45, %v59_v42 }
  0x32   :  { %v75_v47 = vadd.f32 %v74_v46, %v60_v44 }
  0x34   :  { %v76_v48 = vrot.slane %v75_v47, 4 }
  0x36   :  { %v77_v49 = vadd.f32 %v76_v48, %v75_v47 }
  0x38   :  { %v78_v50 = vrot.slane %v77_v49, 2 }
  0x3a   :  { %v79_v51 = vadd.f32 %v78_v50, %v77_v49 }
  0x3c   :  { %v80_v52 = vrot.slane %v79_v51, 1 }
  0x3e   :  { %v81_v54 = vadd.f32 %v80_v52, %v79_v51 }
  0x40   :  { %v82_v55 = vadd.f32 %v81_v54, %v44_v53 }
  0x42   :  { %83 = vst [vmem:[#allocation2] sm:$0x1] %v82_v55 }
  0x49   :  { %v87_v56 = vld [vmem:[#allocation2] sm:$0x1] }
  0x4a   :  { %121 = vrsqrt.f32 %v87_v56  ;;  %vm90_vm0 = vcmp.eq.f32.partialorder %v87_v56, inf  ;;  %v93_v59 = vand.u32 2147483648, %v87_v56  ;;  %vm92_vm1 = vcmp.eq.f32.partialorder %v87_v56, 0.0 }
  0x4b   :  { %vm95_vm2 = vcmp.gt.f32.partialorder %v87_v56, 0.0625 }
  0x54   :  { %v122_v57 = vpop.eup %121 }
  0x55   :  { %v89_v58 = vmul.f32 %v122_v57, %v87_v56 }
  0x57   :  { %v91_v60 = vsel %vm90_vm0, %v87_v56, %v89_v58 }
  0x58   :  { %v94_v61 = vsel %vm92_vm1, %v93_v59, %v91_v60 }
  0x59   :  { %v96_v62 = vadd.f32 1e-07, %v94_v61 }
  0x5b   :  { %123 = vrcp.f32 %v96_v62 }
  0x65   :  { %v124_v63 = vpop.eup %123 }
  0x66   :  { %v98_v0 = vmul.f32 0.25, %v124_v63 }
  0x68   :  { %v99_v1 = vsel %vm95_vm2, %v98_v0, 1.0 }
  0x69   :  { %100 = vst [vmem:[#allocation6] sm:$0x1] %v99_v1 }
  0x6a   :  { %158 = shalt.err (!%p155_p12)
}
  0x6b   :  { %s159_s25 = scalar_lea.hbm %s213_s1, 16 }
  0x6c   :  { %p160_p13 = scmp.ne.s32.totalorder %s213_s1, %s159_s25  ;;  %p163_p0 = scmp.lt.u32.totalorder %s159_s25, %s213_s1 }
  0x6e   :  { %p165_p1 = pnand %p163_p0, %p160_p13 }
  0x70   :  { %168 = shalt.err (!%p165_p1)
}
  0x71   :  { %110 = dma.vmem_to_hbm [thread:$0]  %s108_s20, 16, %s213_s1, [#allocation5]  }
  0x72   :  { %171 = dma.done.wait [#allocation5], 16  }
  0x73   :  { %172 = vsyncadd [#allocation5], 4294967280 }
  0x74   :  { %114 = vsyncpa [#allocation4], 1 }
  0x75   :  { %115 = vsyncpa [#allocation5], 1 }

</bundles_post_ra>
